<compile_context>
chip_gen: v7x
topology: tpu7x:2x2x1
jax: 0.10.0
libtpu: 0.0.40
codegen_flags: <defaults>
</compile_context>

<pallas_src>
import functools

import jax
import jax.numpy as jnp
from jax.experimental import pallas as pl
from jax.experimental.pallas import tpu as pltpu

# VMEM sizing: 48 MiB scoped limit is safe on every generation (v5e/v6e: 128 MiB
# physical, v7x: 64 MiB physical); tm is sized against a smaller working budget to
# leave headroom for compiler-managed temporaries.
_VMEM_LIMIT_BYTES = 48 * 1024 * 1024
_VMEM_WORKING_BUDGET = 36 * 1024 * 1024


def _round_up(n, m):
    return -(-n // m) * m


def _pick_tm(n_rows, vocab, dtype):
    """Largest row tile that fits the VMEM working budget, respecting sublane packing."""
    itemsize = int(jnp.dtype(dtype).itemsize)
    pack = max(8, 32 // itemsize)                 # 8 for f32, 16 for bf16, 32 for int8
    # double-buffered logits block + targets + ~6 f32-sized in-kernel temporaries / row
    per_row = vocab * (2 * itemsize + 6 * 4) + 2 * 4
    tm = int(_VMEM_WORKING_BUDGET // per_row)
    tm = min(tm, 2048, _round_up(n_rows, pack))
    tm = (tm // pack) * pack
    return max(tm, pack)
    # TODO(synk): for vocabularies so large that even a pack-sized full-V row block
    # exceeds the VMEM budget, add a trailing 'arbitrary' V-tiling axis with an
    # online logsumexp (running max / running sum / running target logit).


def _ce_sums_kernel(logits_ref, targets_ref, ce_sum_ref, mask_sum_ref, *,
                    n_valid, ignore_index):
    """Accumulate sum of per-row cross entropy and the valid-mask count.

    ce_i = logsumexp(x_i) - x_i[t_i];   mask_i = (t_i != ignore_index) & (row valid)
    Outputs are (1,1) accumulators resident in VMEM across the whole grid.
    """
    i = pl.program_id(0)
    tm = logits_ref.shape[0]

    @pl.when(i == 0)
    def _init():
        ce_sum_ref[...] = jnp.zeros_like(ce_sum_ref)
        mask_sum_ref[...] = jnp.zeros_like(mask_sum_ref)

    x = logits_ref[...].astype(jnp.float32)                        # (tm, V), cast in-register
    t = targets_ref[...]                                           # (tm, 1) int32

    # Rows appended only to pad N up to a multiple of tm must not contribute.
    row = i * tm + jax.lax.broadcasted_iota(jnp.int32, (tm, 1), 0)
    valid = row < n_valid                                          # (tm, 1) bool

    # logsumexp pieces + target logit, sharing the shifted tile (x - m).
    m = jnp.max(x, axis=-1, keepdims=True)                         # (tm, 1)
    xm = x - m
    s = jnp.sum(jnp.exp(xm), axis=-1, keepdims=True)               # (tm, 1)
    onehot = jax.lax.broadcasted_iota(jnp.int32, x.shape, 1) == t  # built once per tile
    tgt = jnp.sum(jnp.where(onehot, xm, 0.0), axis=-1, keepdims=True)  # = x[t] - m
    ce = jnp.where(valid, jnp.log(s) - tgt, 0.0)                   # (tm, 1)

    if ignore_index is not None:
        msk = jnp.logical_and(valid, t != jnp.int32(ignore_index))
    else:
        msk = valid

    ce_sum_ref[...] += jnp.sum(ce, axis=0, keepdims=True)
    mask_sum_ref[...] += jnp.sum(msk.astype(jnp.float32), axis=0, keepdims=True)


def focal_loss(logits, targets, *, gamma=2.0, reduction="mean",
               ignore_index=None, tm=None):
    """logits: (N, V) float (any dtype); targets: (N,) int."""
    N, V = logits.shape
    targets = targets.astype(jnp.int32)

    if tm is None:
        tm = _pick_tm(N, V, logits.dtype)
    n_pad = _round_up(N, tm)
    if n_pad != N:
        logits_p = jnp.pad(logits, ((0, n_pad - N), (0, 0)))
        targets_p = jnp.pad(targets, (0, n_pad - N))
    else:
        logits_p, targets_p = logits, targets
    targets2d = targets_p.reshape(n_pad, 1)

    ce_sum, mask_sum = pl.pallas_call(
        functools.partial(_ce_sums_kernel, n_valid=N, ignore_index=ignore_index),
        out_shape=(jax.ShapeDtypeStruct((1, 1), jnp.float32),
                   jax.ShapeDtypeStruct((1, 1), jnp.float32)),
        grid=(n_pad // tm,),
        in_specs=[pl.BlockSpec((tm, V), lambda i: (i, 0)),   # logits streamed in stored dtype
                  pl.BlockSpec((tm, 1), lambda i: (i, 0))],  # targets
        out_specs=(pl.BlockSpec((1, 1), lambda i: (0, 0)),   # resident scalar accumulators
                   pl.BlockSpec((1, 1), lambda i: (0, 0))),
        compiler_params=pltpu.CompilerParams(
            dimension_semantics=("arbitrary",),              # grid axis is a reduction
            vmem_limit_bytes=_VMEM_LIMIT_BYTES),
    )(logits_p, targets2d)

    # Scalar glue (faithful to torch): F.cross_entropy(..., 'mean') averages over ALL rows.
    ce_mean = ce_sum[0, 0] / jnp.float32(N)
    mask_sum = mask_sum[0, 0]

    # Focal term depends only on the scalar mean-CE: f where masked, 0 elsewhere.
    pt = jnp.exp(-ce_mean)
    one_minus_pt = jnp.maximum(1.0 - pt, 0.0)   # guard fp rounding before the pow
    f = one_minus_pt ** jnp.float32(gamma) * ce_mean

    if reduction == "mean":
        # focal.sum()/mask.sum() == f when mask is non-empty
        return jnp.where(mask_sum > 0, f, jnp.float32(0.0))
    elif reduction == "sum":
        return f * mask_sum
    else:  # 'none': per-element focal = f on unmasked rows, 0 on masked rows
        if ignore_index is not None:
            mask = (targets[:N] != jnp.int32(ignore_index)).astype(jnp.float32)
        else:
            mask = jnp.ones((N,), jnp.float32)
        return f * mask


def _focal_loss_ref(logits, targets, *, gamma=2.0, reduction="mean",
                    ignore_index=None):
    """Pure-JAX reference mirroring the PyTorch forward, for a sanity check."""
    logits = logits.astype(jnp.float32)
    if ignore_index is not None:
        mask = targets != ignore_index
    else:
        mask = jnp.ones_like(targets, dtype=bool)
    lse = jax.scipy.special.logsumexp(logits, axis=-1)
    tgt = jnp.take_along_axis(logits, targets[:, None].astype(jnp.int32), axis=-1)[:, 0]
    ce = jnp.mean(lse - tgt)
    ce_m = ce * mask.astype(jnp.float32)
    pt = jnp.exp(-ce_m)
    focal = (1.0 - pt) ** gamma * ce_m
    if reduction == "mean":
        ms = jnp.sum(mask).astype(jnp.float32)
        return jnp.where(ms > 0, jnp.sum(focal) / ms, 0.0)
    elif reduction == "sum":
        return jnp.sum(focal)
    return focal


if __name__ == "__main__":
    # FocalLoss has no learnable parameters; gamma/reduction/ignore_index are
    # plain hyperparameters set deterministically here.
    gamma = 2.0
    batch, seq, vocab = 2, 8, 32
    N = batch * seq                   # flattened (batch*seq, vocab) layout, see header

    key = jax.random.PRNGKey(0)
    k_logits, k_targets, k_logits2, k_targets2 = jax.random.split(key, 4)
    logits = jax.random.normal(k_logits, (N, vocab), dtype=jnp.float32)
    targets = jax.random.randint(k_targets, (N,), 0, vocab, dtype=jnp.int32)

    # Primary run (matches the module defaults used in training: mean + PAD=0 ignored).
    out = focal_loss(logits, targets, gamma=gamma, reduction="mean", ignore_index=0)
    out = jax.block_until_ready(out)
    ref = _focal_loss_ref(logits, targets, gamma=gamma, reduction="mean", ignore_index=0)
    assert jnp.allclose(out, ref, rtol=1e-5, atol=1e-6), (out, ref)

    # All reduction / ignore_index combinations.
    for reduction in ("mean", "sum", "none"):
        for ignore_index in (None, 0):
            o = focal_loss(logits, targets, gamma=gamma,
                           reduction=reduction, ignore_index=ignore_index)
            r = _focal_loss_ref(logits, targets, gamma=gamma,
                                reduction=reduction, ignore_index=ignore_index)
            assert jnp.allclose(o, r, rtol=1e-5, atol=1e-6), (reduction, ignore_index, o, r)

    # Multi-step grid + padded rows (N not a multiple of the row tile).
    N2 = 20
    logits2 = jax.random.normal(k_logits2, (N2, vocab), dtype=jnp.float32)
    targets2 = jax.random.randint(k_targets2, (N2,), 0, vocab, dtype=jnp.int32)
    o2 = focal_loss(logits2, targets2, gamma=gamma, reduction="mean",
                    ignore_index=0, tm=8)
    r2 = _focal_loss_ref(logits2, targets2, gamma=gamma, reduction="mean",
                         ignore_index=0)
    assert jnp.allclose(o2, r2, rtol=1e-5, atol=1e-6), (o2, r2)

    # bf16 logits stream in their stored dtype (half the HBM bytes), cast in-register.
    logits_bf16 = logits.astype(jnp.bfloat16)
    o3 = focal_loss(logits_bf16, targets, gamma=gamma, reduction="sum", ignore_index=0)
    r3 = _focal_loss_ref(logits_bf16, targets, gamma=gamma, reduction="sum",
                         ignore_index=0)
    assert jnp.allclose(o3, r3, rtol=1e-4, atol=1e-5), (o3, r3)

    print("KERNEL_OK")
</pallas_src>

<mosaic_0001>
module attributes {stable_mosaic.version = 11 : i64} {
  func.func @_ce_sums_kernel(%arg0: i32, %arg1: memref<16x32xf32, #tpu.memory_space<vmem>>, %arg2: memref<16x1xi32, #tpu.memory_space<vmem>>, %arg3: memref<1x1xf32, #tpu.memory_space<vmem>>, %arg4: memref<1x1xf32, #tpu.memory_space<vmem>>) attributes {dimension_semantics = [#tpu.dimension_semantics<arbitrary>], iteration_bounds = array<i64: 1>, scalar_prefetch = 0 : i64, scratch_operands = 0 : i64, tpu.core_type = #tpu.core_type<tc>, window_params = [{transform_indices = @transform_0, window_bounds = array<i64: 16, 32>}, {transform_indices = @transform_1, window_bounds = array<i64: 16, 1>}, {pipeline_mode = #tpu.pipeline_mode<synchronous>, transform_indices = @transform_2, window_bounds = array<i64: 1, 1>}, {pipeline_mode = #tpu.pipeline_mode<synchronous>, transform_indices = @transform_3, window_bounds = array<i64: 1, 1>}]} {
    %c0_i32 = arith.constant 0 : i32
    %0 = arith.cmpi eq, %arg0, %c0_i32 : i32
    %1 = arith.extui %0 : i1 to i32
    %c0_i32_0 = arith.constant 0 : i32
    %2 = arith.cmpi ne, %1, %c0_i32_0 : i32
    scf.if %2 {
      %cst_20 = arith.constant 0.000000e+00 : f32
      %44 = vector.broadcast %cst_20 : f32 to vector<1x1xf32>
      %c0_21 = arith.constant 0 : index
      %c0_22 = arith.constant 0 : index
      %45 = vector.load %arg3[%c0_21, %c0_22] : memref<1x1xf32, #tpu.memory_space<vmem>>, vector<1x1xf32>
      tpu.vector_store %arg3[%c0_21, %c0_22], %44 {strides = array<i32>} : memref<1x1xf32, #tpu.memory_space<vmem>>, vector<1x1xf32>,
      %cst_23 = arith.constant 0.000000e+00 : f32
      %46 = vector.broadcast %cst_23 : f32 to vector<1x1xf32>
      %c0_24 = arith.constant 0 : index
      %c0_25 = arith.constant 0 : index
      %47 = vector.load %arg4[%c0_24, %c0_25] : memref<1x1xf32, #tpu.memory_space<vmem>>, vector<1x1xf32>
      tpu.vector_store %arg4[%c0_24, %c0_25], %46 {strides = array<i32>} : memref<1x1xf32, #tpu.memory_space<vmem>>, vector<1x1xf32>,
    } else {
    }
    %c0 = arith.constant 0 : index
    %c0_1 = arith.constant 0 : index
    %3 = vector.load %arg1[%c0, %c0_1] : memref<16x32xf32, #tpu.memory_space<vmem>>, vector<16x32xf32>
    %c0_2 = arith.constant 0 : index
    %c0_3 = arith.constant 0 : index
    %4 = vector.load %arg2[%c0_2, %c0_3] : memref<16x1xi32, #tpu.memory_space<vmem>>, vector<16x1xi32>
    %c16_i32 = arith.constant 16 : i32
    %5 = arith.muli %arg0, %c16_i32 : i32
    %6 = tpu.iota {dimensions = array<i32: 0>} : vector<16x1xi32>
    %7 = vector.broadcast %5 : i32 to vector<16x1xi32>
    %8 = arith.addi %7, %6 : vector<16x1xi32>
    %c16_i32_4 = arith.constant 16 : i32
    %9 = vector.broadcast %c16_i32_4 : i32 to vector<16x1xi32>
    %10 = arith.cmpi slt, %8, %9 : vector<16x1xi32>
    %cst = arith.constant dense<0xFF800000> : vector<16xf32>
    %11 = vector.multi_reduction <maximumf>, %3, %cst [1] : vector<16x32xf32> to vector<16xf32>
    %12 = vector.shape_cast %11 : vector<16xf32> to vector<16x1xf32>
    %13 = vector.broadcast %12 : vector<16x1xf32> to vector<16x32xf32>
    %14 = arith.subf %3, %13 : vector<16x32xf32>
    %15 = math.exp %14 : vector<16x32xf32>
    %cst_5 = arith.constant dense<0.000000e+00> : vector<16xf32>
    %16 = vector.multi_reduction <add>, %15, %cst_5 [1] : vector<16x32xf32> to vector<16xf32>
    %17 = vector.shape_cast %16 : vector<16xf32> to vector<16x1xf32>
    %18 = tpu.iota {dimensions = array<i32: 1>} : vector<16x32xi32>
    %19 = vector.broadcast %4 : vector<16x1xi32> to vector<16x32xi32>
    %20 = arith.cmpi eq, %18, %19 : vector<16x32xi32>
    %cst_6 = arith.constant 0.000000e+00 : f32
    %21 = vector.broadcast %cst_6 : f32 to vector<16x32xf32>
    %22 = arith.select %20, %14, %21 : vector<16x32xi1>, vector<16x32xf32>
    %cst_7 = arith.constant dense<0.000000e+00> : vector<16xf32>
    %23 = vector.multi_reduction <add>, %22, %cst_7 [1] : vector<16x32xf32> to vector<16xf32>
    %24 = vector.shape_cast %23 : vector<16xf32> to vector<16x1xf32>
    %25 = math.log %17 : vector<16x1xf32>
    %26 = arith.subf %25, %24 : vector<16x1xf32>
    %cst_8 = arith.constant 0.000000e+00 : f32
    %27 = vector.broadcast %cst_8 : f32 to vector<16x1xf32>
    %28 = arith.select %10, %26, %27 : vector<16x1xi1>, vector<16x1xf32>
    %c0_i32_9 = arith.constant 0 : i32
    %29 = vector.broadcast %c0_i32_9 : i32 to vector<16x1xi32>
    %30 = arith.cmpi ne, %4, %29 : vector<16x1xi32>
    %31 = arith.andi %10, %30 : vector<16x1xi1>
    %c0_10 = arith.constant 0 : index
    %c0_11 = arith.constant 0 : index
    %32 = vector.load %arg3[%c0_10, %c0_11] : memref<1x1xf32, #tpu.memory_space<vmem>>, vector<1x1xf32>
    %cst_12 = arith.constant dense<0.000000e+00> : vector<1xf32>
    %33 = vector.multi_reduction <add>, %28, %cst_12 [0] : vector<16x1xf32> to vector<1xf32>
    %34 = vector.shape_cast %33 : vector<1xf32> to vector<1x1xf32>
    %35 = arith.addf %32, %34 : vector<1x1xf32>
    %c0_13 = arith.constant 0 : index
    %c0_14 = arith.constant 0 : index
    %36 = vector.load %arg3[%c0_13, %c0_14] : memref<1x1xf32, #tpu.memory_space<vmem>>, vector<1x1xf32>
    tpu.vector_store %arg3[%c0_13, %c0_14], %35 {strides = array<i32>} : memref<1x1xf32, #tpu.memory_space<vmem>>, vector<1x1xf32>,
    %c0_15 = arith.constant 0 : index
    %c0_16 = arith.constant 0 : index
    %37 = vector.load %arg4[%c0_15, %c0_16] : memref<1x1xf32, #tpu.memory_space<vmem>>, vector<1x1xf32>
    %38 = arith.extui %31 : vector<16x1xi1> to vector<16x1xi32>
    %39 = arith.sitofp %38 : vector<16x1xi32> to vector<16x1xf32>
    %cst_17 = arith.constant dense<0.000000e+00> : vector<1xf32>
    %40 = vector.multi_reduction <add>, %39, %cst_17 [0] : vector<16x1xf32> to vector<1xf32>
    %41 = vector.shape_cast %40 : vector<1xf32> to vector<1x1xf32>
    %42 = arith.addf %37, %41 : vector<1x1xf32>
    %c0_18 = arith.constant 0 : index
    %c0_19 = arith.constant 0 : index
    %43 = vector.load %arg4[%c0_18, %c0_19] : memref<1x1xf32, #tpu.memory_space<vmem>>, vector<1x1xf32>
    tpu.vector_store %arg4[%c0_18, %c0_19], %42 {strides = array<i32>} : memref<1x1xf32, #tpu.memory_space<vmem>>, vector<1x1xf32>,
    return
  }
  func.func @transform_0(%arg0: i32) -> (i32, i32) {
    %c0_i32 = arith.constant 0 : i32
    %c0_i32_0 = arith.constant 0 : i32
    return %arg0, %c0_i32 : i32, i32
  }
  func.func @transform_1(%arg0: i32) -> (i32, i32) {
    %c0_i32 = arith.constant 0 : i32
    %c0_i32_0 = arith.constant 0 : i32
    return %arg0, %c0_i32 : i32, i32
  }
  func.func @transform_2(%arg0: i32) -> (i32, i32) {
    %c0_i32 = arith.constant 0 : i32
    %c0_i32_0 = arith.constant 0 : i32
    %c0_i32_1 = arith.constant 0 : i32
    return %c0_i32, %c0_i32_0 : i32, i32
  }
  func.func @transform_3(%arg0: i32) -> (i32, i32) {
    %c0_i32 = arith.constant 0 : i32
    %c0_i32_0 = arith.constant 0 : i32
    %c0_i32_1 = arith.constant 0 : i32
    return %c0_i32, %c0_i32_0 : i32, i32
  }
}

</mosaic_0001>

<bundles_post_ra>
// kernel: tpu_custom_call.1
= control target key start
LH: loop header
LB: loop body
LE: loop exit
PB: predicated region body
PF: predicated region fallthrough
CT: control target
= control target key end

     0   :  { %9 = vsyncpa [#allocation3], 0  ;;  %vm35_vm0 = vcmask 261120   ;;  %vm100_vm1 = vcmask 7168   ;;  %v204_v4 = vmov 0   ;;  %v205_v6 = vmov 0.0   ;;  %s276_s0 = inlined_call_operand.vmem [shape: f32[16,32], index: 0, kind: input, shape index: {}]   ;;  %s277_s1 = inlined_call_operand.vmem [shape: s32[16,1], index: 1, kind: input, shape index: {}]   ;;  %s278_s2 = inlined_call_operand.hbm [shape: f32[1,1], index: 2, kind: output, shape index: {0}]   ;;  %s279_s3 = inlined_call_operand.hbm [shape: f32[1,1], index: 3, kind: output, shape index: {1}]  }
   0x1   :  { %v22_v0 = vld [vmem:[%s276_s0] sm:$0xff]  ;;  %v23_v1 = vld [vmem:[%s276_s0 + $0x8] sm:$0xff]  ;;  %146 = vset.pattern.permute.xlu1 %v204_v4  ;;  %147 = vset.pattern.permute.xlu0 %v204_v4 }
   0x2   :  { %v24_v2 = vld [vmem:[%s277_s1] sm:$0xff]  ;;  %v36_v3 = vsel %vm35_vm0, %v22_v0, -inf  ;;  %v25_v5 = vld [vmem:[%s277_s1 + $0x8] sm:$0xff] }
   0x3   :  { %vm80_vm2 = vcmp.ne.s32.totalorder %v24_v2, 0  ;;  %37 = vmax.xlane.f32.xlu0 %v36_v3  ;;  %57 = vperm.xlu1 %146, %v24_v2   ;;  %vm81_vm3 = vcmp.ne.s32.totalorder %v25_v5, 0 }
   0x4   :  { %v140_v7 = vsel %vm80_vm2, 1.0, %v205_v6 }
   0x5   :  { %10 = vsyncpa [#allocation5], 0  ;;  %v39_v8 = vsel %vm35_vm0, %v23_v1, -inf  ;;  %v101_v9 = vsel %vm100_vm1, %v140_v7, 0.0  ;;  %v141_v10 = vsel %vm81_vm3, 1.0, %v205_v6  ;;  %v54_v18 = vlaneseq  ;;  %s206_s0 = smov [#allocation4]  }
   0x6   :  { %v102_v11 = vsel %vm100_vm1, %v141_v10, 0.0  ;;  %vm19_vm6 = vcmask 0   ;;  %s128_s1 = sshll.u32 %s206_s0, 4  ;;  %s129_s1 = int_to_ptr.vmem [resolvable:$true] %s128_s1 }
   0x7   :  { %v103_v12 = vadd.f32 %v102_v11, %v101_v9  ;;  %40 = vmax.xlane.f32.xlu0 %v39_v8  ;;  %60 = vperm.xlu1 %146, %v25_v5   ;;  %v55_v21 = vand.u32 127, %v54_v18  ;;  %20 = vst.msk [vmem:[#allocation2] sm:$0x1] %vm19_vm6, %v205_v6  ;;  %21 = vst.msk [vmem:[#allocation4] sm:$0x1] %vm19_vm6, %v205_v6  ;;  %s156_s20 = scalar_lea.vmem %s129_s1, 16  ;;  %p161_p1 = scmp.lt.s32.totalorder %s129_s1, %s129_s1 }
   0x8   :  { %p157_p0 = scmp.ne.s32.totalorder %s129_s1, %s156_s20  ;;  %s160_s21 = scalar_lea.vmem %s129_s1, 32 }
   0x9   :  { %v104_v31 = vrot.slane %v103_v12, 4  ;;  %p162_p2 = scmp.lt.s32.totalorder %s160_s21, %s156_s20 }
   0xb   :  { %v105_v32 = vadd.f32 %v104_v31, %v103_v12  ;;  %p163_p3 = por %p162_p2, %p161_p1 }
   0xd   :  { %v106_v33 = vrot.slane %v105_v32, 2  ;;  %p164_p4 = pnand %p163_p3, %p157_p0 }
   0xe   :  { %v95_v37 = vld [vmem:[#allocation4] sm:$0x1] }
   0xf   :  { %v107_v34 = vadd.f32 %v106_v33, %v105_v32 }
  0x11   :  { %v108_v35 = vrot.slane %v107_v34, 1 }
  0x13   :  { %v109_v36 = vadd.f32 %v108_v35, %v107_v34 }
  0x15   :  { %v110_v38 = vadd.f32 %v109_v36, %v95_v37 }
  0x17   :  { %111 = vst.msk [vmem:[#allocation4] sm:$0x1] %vm19_vm6, %v110_v38 }
  0x82   :  { %v58_v20 = vpop.permute.xlu1 %57 }
  0x83   :  { %vm62_vm4 = vcmp.eq.s32.totalorder %v55_v21, %v58_v20 }
  0x86   :  { %v61_v23 = vpop.permute.xlu1 %60 }
  0x87   :  { %vm63_vm5 = vcmp.eq.s32.totalorder %v55_v21, %v61_v23 }
  0x90   :  { %v38_v13 = vpop.xlane.xlu0 %37 }
  0x91   :  { %v42_v14 = vsub.f32 %v22_v0, %v38_v13 }
  0x93   :  { %v44_v15 = vmul.f32 1.442695, %v42_v14  ;;  %v64_v25 = vsel %vm62_vm4, %v42_v14, 0.0 }
  0x94   :  { %v41_v16 = vpop.xlane.xlu0 %40  ;;  %v66_v27 = vsel %vm35_vm0, %v64_v25, 0.0 }
  0x95   :  { %148 = vpow2.f32 %v44_v15  ;;  %v43_v17 = vsub.f32 %v23_v1, %v41_v16 }
  0x97   :  { %v46_v19 = vmul.f32 1.442695, %v43_v17  ;;  %v65_v29 = vsel %vm63_vm5, %v43_v17, 0.0 }
  0x98   :  { %v69_v30 = vsel %vm35_vm0, %v65_v29, 0.0 }
  0x99   :  { %150 = vpow2.f32 %v46_v19 }
  0x9f   :  { %v149_v22 = vpop.eup %148 }
  0xa0   :  { %v48_v24 = vsel %vm35_vm0, %v149_v22, 0.0 }
  0xa1   :  { %49 = vadd.xlane.f32.xlu0 %v48_v24 }
  0xa3   :  { %v151_v26 = vpop.eup %150 }
  0xa4   :  { %v51_v28 = vsel %vm35_vm0, %v151_v26, 0.0 }
  0xa5   :  { %67 = vadd.xlane.f32.xlu0 %v66_v27  ;;  %52 = vadd.xlane.f32.xlu1 %v51_v28 }
  0xa9   :  { %70 = vadd.xlane.f32.xlu0 %v69_v30 }
  0xaa   :  { %167 = shalt.err (!%p164_p4)
}
  0xab   :  { %s168_s24 = scalar_lea.hbm %s279_s3, 16 }
  0xac   :  { %p169_p5 = scmp.ne.s32.totalorder %s279_s3, %s168_s24  ;;  %p172_p6 = scmp.lt.u32.totalorder %s168_s24, %s279_s3 }
  0xae   :  { %p174_p7 = pnand %p172_p6, %p169_p5 }
  0xb0   :  { %177 = shalt.err (!%p174_p7)
}
  0xb1   :  { %131 = dma.vmem_to_hbm [thread:$0]  %s129_s1, 16, %s279_s3, [#allocation5]   ;;  %v84_v55 = vld [vmem:[#allocation2] sm:$0x1] }
  0xb2   :  { %s207_s3 = smov [#allocation2]  }
  0xb3   :  { %s118_s4 = sshll.u32 %s207_s3, 4  ;;  %s119_s4 = int_to_ptr.vmem [resolvable:$true] %s118_s4 }
  0xb4   :  { %s178_s5 = scalar_lea.vmem %s119_s4, 16  ;;  %s182_s6 = scalar_lea.vmem %s119_s4, 32 }
  0xb5   :  { %p179_p8 = scmp.ne.s32.totalorder %s119_s4, %s178_s5  ;;  %p183_p9 = scmp.lt.s32.totalorder %s119_s4, %s119_s4 }
  0xb6   :  { %p184_p10 = scmp.lt.s32.totalorder %s182_s6, %s178_s5 }
  0xb8   :  { %p185_p11 = por %p184_p10, %p183_p9 }
  0xba   :  { %p186_p12 = pnand %p185_p11, %p179_p8 }
 0x12e   :  { %v50_v39 = vpop.xlane.xlu0 %49 }
 0x12f   :  { %152 = vlog2.f32 %v50_v39 }
 0x132   :  { %v53_v40 = vpop.xlane.xlu1 %52  ;;  %v68_v42 = vpop.xlane.xlu0 %67 }
 0x133   :  { %154 = vlog2.f32 %v53_v40 }
 0x136   :  { %v71_v46 = vpop.xlane.xlu0 %70 }
 0x139   :  { %v153_v41 = vpop.eup %152 }
 0x13a   :  { %v73_v43 = vmul.f32 0.6931472, %v153_v41 }
 0x13c   :  { %v76_v47 = vsub.f32 %v73_v43, %v68_v42 }
 0x13d   :  { %v155_v44 = vpop.eup %154 }
 0x13e   :  { %v75_v45 = vmul.f32 0.6931472, %v155_v44 }
 0x140   :  { %v77_v48 = vsub.f32 %v75_v45, %v71_v46 }
 0x142   :  { %v85_v49 = vadd.f32 %v77_v48, %v76_v47 }
 0x144   :  { %v86_v50 = vrot.slane %v85_v49, 4 }
 0x146   :  { %v87_v51 = vadd.f32 %v86_v50, %v85_v49 }
 0x148   :  { %v88_v52 = vrot.slane %v87_v51, 2 }
 0x14a   :  { %v89_v53 = vadd.f32 %v88_v52, %v87_v51 }
 0x14c   :  { %v90_v54 = vrot.slane %v89_v53, 1 }
 0x14e   :  { %v91_v56 = vadd.f32 %v90_v54, %v89_v53 }
 0x150   :  { %v92_v57 = vadd.f32 %v91_v56, %v84_v55 }
 0x152   :  { %94 = vst.msk [vmem:[#allocation2] sm:$0x1] %vm19_vm6, %v92_v57 }
 0x153   :  { %189 = shalt.err (!%p186_p12)
}
 0x154   :  { %s190_s9 = scalar_lea.hbm %s278_s2, 16 }
 0x155   :  { %p191_p13 = scmp.ne.s32.totalorder %s278_s2, %s190_s9  ;;  %p194_p0 = scmp.lt.u32.totalorder %s190_s9, %s278_s2 }
 0x157   :  { %p196_p1 = pnand %p194_p0, %p191_p13 }
 0x159   :  { %199 = shalt.err (!%p196_p1)
}
 0x15a   :  { %121 = dma.vmem_to_hbm [thread:$0]  %s119_s4, 16, %s278_s2, [#allocation3]  }
 0x15b   :  { %200 = dma.done.wait [#allocation3], 16  }
 0x15c   :  { %201 = vsyncadd [#allocation3], 4294967280 }
 0x15d   :  { %202 = dma.done.wait [#allocation5], 16  }
 0x15e   :  { %203 = vsyncadd [#allocation5], 4294967280 }
 0x15f   :  { %138 = vsyncpa [#allocation3], 1 }
 0x160   :  { %139 = vsyncpa [#allocation5], 1 }

</bundles_post_ra>
